<compile_context>
chip_gen: v5e
topology: v5e:2x2
jax: 0.10.0
libtpu: 0.0.40
codegen_flags: <defaults>
</compile_context>

<pallas_src>
import jax
import jax.numpy as jnp
from jax.experimental import pallas as pl
from jax.experimental.pallas import tpu as pltpu


_SQRT_2_OVER_PI = 0.7978845608028654


def _gelu_tanh(x):
    # TODO(synk): config.hidden_act is assumed to be GELU; the tanh
    # approximation (HF "gelu_new" / torch GELU(approximate='tanh')) is used
    # instead of exact erf-based GELU for guaranteed Mosaic lowering.
    return 0.5 * x * (1.0 + jnp.tanh(_SQRT_2_OVER_PI * (x + 0.044715 * x * x * x)))


def electra_disc_pred_kernel(x_ref, w1_ref, b1_ref, w2_ref, b2_ref, o_ref):
    # Dense H -> H on the MXU; keep operand dtype (bf16 ok), f32 accumulate.
    h = jnp.dot(x_ref[...], w1_ref[...], preferred_element_type=jnp.float32)
    h = h + b1_ref[...].astype(jnp.float32)
    h = _gelu_tanh(h)
    # Prediction head H -> 1: broadcast multiply + cross-lane reduction (XLU).
    w2 = w2_ref[...].astype(jnp.float32)          # (1, H)
    logits = jnp.sum(h * w2, axis=-1, keepdims=True)
    logits = logits + b2_ref[...].astype(jnp.float32)
    o_ref[...] = logits.astype(o_ref.dtype)


def electra_discriminator_predictions(hidden_states, w1, b1, w2, b2, *, block_m=512):
    """hidden_states: [B, S, H]; w1: [H, H] (in, out layout); b1: [H];
    w2: [1, H] (nn.Linear(H, 1).weight); b2: [1]. Returns logits [B, S]."""
    B, S, H = hidden_states.shape
    M = B * S
    x2 = hidden_states.reshape(M, H)
    b1_2 = b1.reshape(1, H)
    w2_2 = w2.reshape(1, H)
    b2_2 = jnp.asarray(b2).reshape(1, 1)

    tm = min(block_m, M)
    grid = (pl.cdiv(M, tm),)

    elem = jnp.dtype(hidden_states.dtype).itemsize
    cost = pl.CostEstimate(
        flops=2 * M * H * H + 12 * M * H,          # dense + gelu + pred head
        transcendentals=M * H,                     # tanh
        bytes_accessed=(M * H + H * H + 3 * H) * elem + M * elem,
    )

    out = pl.pallas_call(
        electra_disc_pred_kernel,
        out_shape=jax.ShapeDtypeStruct((M, 1), hidden_states.dtype),
        grid=grid,
        in_specs=[
            pl.BlockSpec((tm, H), lambda i: (i, 0)),   # activation tile
            pl.BlockSpec((H, H), lambda i: (0, 0)),    # W1 (VMEM-resident, fetched once)
            pl.BlockSpec((1, H), lambda i: (0, 0)),    # b1
            pl.BlockSpec((1, H), lambda i: (0, 0)),    # W2 row
            pl.BlockSpec((1, 1), lambda i: (0, 0)),    # b2
        ],
        out_specs=pl.BlockSpec((tm, 1), lambda i: (i, 0)),
        compiler_params=pltpu.CompilerParams(
            dimension_semantics=("parallel",),
            vmem_limit_bytes=64 * 1024 * 1024,
        ),
        cost_estimate=cost,
    )(x2, w1, b1_2, w2_2, b2_2)

    return out.reshape(B, S)


def _reference(hidden_states, w1, b1, w2, b2):
    x = hidden_states.astype(jnp.float32)
    h = x @ w1.astype(jnp.float32) + b1.astype(jnp.float32)
    h = _gelu_tanh(h)
    logits = h @ w2.astype(jnp.float32).T + b2.astype(jnp.float32)
    return logits[..., 0]


if __name__ == "__main__":
    key = jax.random.PRNGKey(0)

    # ---- Test 1: small f32 shapes (full-block path) ------------------------
    B, S, H = 2, 8, 32
    k1, k2, k3, k4, k5 = jax.random.split(key, 5)
    x = jax.random.normal(k1, (B, S, H), dtype=jnp.float32)
    # nn.Linear(H, H): torch weight is [out, in]; store transposed [in, out].
    w1 = (jax.random.normal(k2, (H, H), dtype=jnp.float32) * 0.02).T
    b1 = jax.random.normal(k3, (H,), dtype=jnp.float32) * 0.02
    # nn.Linear(H, 1): weight [1, H], bias [1].
    w2 = jax.random.normal(k4, (1, H), dtype=jnp.float32) * 0.02
    b2 = jax.random.normal(k5, (1,), dtype=jnp.float32) * 0.02

    out = electra_discriminator_predictions(x, w1, b1, w2, b2)
    out = jax.block_until_ready(out)
    ref = _reference(x, w1, b1, w2, b2)
    assert out.shape == (B, S)
    assert jnp.allclose(out, ref, atol=1e-5, rtol=1e-5), \
        f"f32 max err {jnp.max(jnp.abs(out - ref))}"

    # ---- Test 2: bf16 activations/weights, tiled (8,128)-aligned path ------
    B2, S2, H2 = 4, 384, 128            # M = 1536 = 3 x 512-row tiles (grid=3)
    j1, j2, j3, j4, j5 = jax.random.split(jax.random.PRNGKey(1), 5)
    x_b = jax.random.normal(j1, (B2, S2, H2), dtype=jnp.float32).astype(jnp.bfloat16)
    w1_b = ((jax.random.normal(j2, (H2, H2), dtype=jnp.float32) * 0.02).T
            ).astype(jnp.bfloat16)
    b1_b = (jax.random.normal(j3, (H2,), dtype=jnp.float32) * 0.02).astype(jnp.bfloat16)
    w2_b = (jax.random.normal(j4, (1, H2), dtype=jnp.float32) * 0.02).astype(jnp.bfloat16)
    b2_b = (jax.random.normal(j5, (1,), dtype=jnp.float32) * 0.02).astype(jnp.bfloat16)

    out_b = electra_discriminator_predictions(x_b, w1_b, b1_b, w2_b, b2_b, block_m=512)
    out_b = jax.block_until_ready(out_b)
    ref_b = _reference(x_b, w1_b, b1_b, w2_b, b2_b)
    assert out_b.shape == (B2, S2)
    assert jnp.allclose(out_b.astype(jnp.float32), ref_b, atol=1e-2, rtol=1e-2), \
        f"bf16 max err {jnp.max(jnp.abs(out_b.astype(jnp.float32) - ref_b))}"

    print("KERNEL_OK")
</pallas_src>

<mosaic_0001>
module attributes {stable_mosaic.version = 11 : i64} {
  func.func @electra_disc_pred_kernel(%arg0: i32, %arg1: memref<16x32xf32, #tpu.memory_space<vmem>>, %arg2: memref<32x32xf32, #tpu.memory_space<vmem>>, %arg3: memref<1x32xf32, #tpu.memory_space<vmem>>, %arg4: memref<1x32xf32, #tpu.memory_space<vmem>>, %arg5: memref<1x1xf32, #tpu.memory_space<vmem>>, %arg6: memref<16x1xf32, #tpu.memory_space<vmem>>) attributes {dimension_semantics = [#tpu.dimension_semantics<parallel>], iteration_bounds = array<i64: 1>, scalar_prefetch = 0 : i64, scratch_operands = 0 : i64, tpu.core_type = #tpu.core_type<tc>, window_params = [{transform_indices = @transform_0, window_bounds = array<i64: 16, 32>}, {pipeline_mode = #tpu.pipeline_mode<synchronous>, transform_indices = @transform_1, window_bounds = array<i64: 32, 32>}, {pipeline_mode = #tpu.pipeline_mode<synchronous>, transform_indices = @transform_2, window_bounds = array<i64: 1, 32>}, {pipeline_mode = #tpu.pipeline_mode<synchronous>, transform_indices = @transform_3, window_bounds = array<i64: 1, 32>}, {pipeline_mode = #tpu.pipeline_mode<synchronous>, transform_indices = @transform_4, window_bounds = array<i64: 1, 1>}, {transform_indices = @transform_5, window_bounds = array<i64: 16, 1>}]} {
    %c0 = arith.constant 0 : index
    %c0_0 = arith.constant 0 : index
    %0 = vector.load %arg1[%c0, %c0_0] : memref<16x32xf32, #tpu.memory_space<vmem>>, vector<16x32xf32>
    %c0_1 = arith.constant 0 : index
    %c0_2 = arith.constant 0 : index
    %1 = vector.load %arg2[%c0_1, %c0_2] : memref<32x32xf32, #tpu.memory_space<vmem>>, vector<32x32xf32>
    %cst = arith.constant dense<0.000000e+00> : vector<16x32xf32>
    %2 = tpu.matmul %0, %1, %cst {dimension_numbers = #tpu.dot_dimension_numbers<[1], [0], [0], [1], [0, 0, 1, 1], [], []>} : vector<16x32xf32>, vector<32x32xf32>, vector<16x32xf32> -> vector<16x32xf32>
    %c0_3 = arith.constant 0 : index
    %c0_4 = arith.constant 0 : index
    %3 = vector.load %arg3[%c0_3, %c0_4] : memref<1x32xf32, #tpu.memory_space<vmem>>, vector<1x32xf32>
    %4 = vector.broadcast %3 : vector<1x32xf32> to vector<16x32xf32>
    %5 = arith.addf %2, %4 : vector<16x32xf32>
    %cst_5 = arith.constant 5.000000e-01 : f32
    %6 = vector.broadcast %cst_5 : f32 to vector<16x32xf32>
    %7 = arith.mulf %6, %5 : vector<16x32xf32>
    %cst_6 = arith.constant 4.471500e-02 : f32
    %8 = vector.broadcast %cst_6 : f32 to vector<16x32xf32>
    %9 = arith.mulf %8, %5 : vector<16x32xf32>
    %10 = arith.mulf %9, %5 : vector<16x32xf32>
    %11 = arith.mulf %10, %5 : vector<16x32xf32>
    %12 = arith.addf %5, %11 : vector<16x32xf32>
    %cst_7 = arith.constant 0.797884583 : f32
    %13 = vector.broadcast %cst_7 : f32 to vector<16x32xf32>
    %14 = arith.mulf %13, %12 : vector<16x32xf32>
    %15 = math.tanh %14 : vector<16x32xf32>
    %cst_8 = arith.constant 1.000000e+00 : f32
    %16 = vector.broadcast %cst_8 : f32 to vector<16x32xf32>
    %17 = arith.addf %16, %15 : vector<16x32xf32>
    %18 = arith.mulf %7, %17 : vector<16x32xf32>
    %c0_9 = arith.constant 0 : index
    %c0_10 = arith.constant 0 : index
    %19 = vector.load %arg4[%c0_9, %c0_10] : memref<1x32xf32, #tpu.memory_space<vmem>>, vector<1x32xf32>
    %20 = vector.broadcast %19 : vector<1x32xf32> to vector<16x32xf32>
    %21 = arith.mulf %18, %20 : vector<16x32xf32>
    %cst_11 = arith.constant dense<0.000000e+00> : vector<16xf32>
    %22 = vector.multi_reduction <add>, %21, %cst_11 [1] : vector<16x32xf32> to vector<16xf32>
    %23 = vector.shape_cast %22 : vector<16xf32> to vector<16x1xf32>
    %c0_12 = arith.constant 0 : index
    %c0_13 = arith.constant 0 : index
    %24 = vector.load %arg5[%c0_12, %c0_13] : memref<1x1xf32, #tpu.memory_space<vmem>>, vector<1x1xf32>
    %25 = vector.broadcast %24 : vector<1x1xf32> to vector<16x1xf32>
    %26 = arith.addf %23, %25 : vector<16x1xf32>
    %c0_14 = arith.constant 0 : index
    %c0_15 = arith.constant 0 : index
    %27 = vector.load %arg6[%c0_14, %c0_15] : memref<16x1xf32, #tpu.memory_space<vmem>>, vector<16x1xf32>
    tpu.vector_store %arg6[%c0_14, %c0_15], %26 {strides = array<i32>} : memref<16x1xf32, #tpu.memory_space<vmem>>, vector<16x1xf32>,
    return
  }
  func.func @transform_0(%arg0: i32) -> (i32, i32) {
    %c0_i32 = arith.constant 0 : i32
    %c0_i32_0 = arith.constant 0 : i32
    return %arg0, %c0_i32 : i32, i32
  }
  func.func @transform_1(%arg0: i32) -> (i32, i32) {
    %c0_i32 = arith.constant 0 : i32
    %c0_i32_0 = arith.constant 0 : i32
    %c0_i32_1 = arith.constant 0 : i32
    return %c0_i32, %c0_i32_0 : i32, i32
  }
  func.func @transform_2(%arg0: i32) -> (i32, i32) {
    %c0_i32 = arith.constant 0 : i32
    %c0_i32_0 = arith.constant 0 : i32
    %c0_i32_1 = arith.constant 0 : i32
    return %c0_i32, %c0_i32_0 : i32, i32
  }
  func.func @transform_3(%arg0: i32) -> (i32, i32) {
    %c0_i32 = arith.constant 0 : i32
    %c0_i32_0 = arith.constant 0 : i32
    %c0_i32_1 = arith.constant 0 : i32
    return %c0_i32, %c0_i32_0 : i32, i32
  }
  func.func @transform_4(%arg0: i32) -> (i32, i32) {
    %c0_i32 = arith.constant 0 : i32
    %c0_i32_0 = arith.constant 0 : i32
    %c0_i32_1 = arith.constant 0 : i32
    return %c0_i32, %c0_i32_0 : i32, i32
  }
  func.func @transform_5(%arg0: i32) -> (i32, i32) {
    %c0_i32 = arith.constant 0 : i32
    %c0_i32_0 = arith.constant 0 : i32
    return %arg0, %c0_i32 : i32, i32
  }
}

</mosaic_0001>

<bundles_post_ra>
// kernel: tpu_custom_call.1
= control target key start
LH: loop header
LB: loop body
LE: loop exit
PB: predicated region body
PF: predicated region fallthrough
CT: control target
= control target key end

     0   :  { %s267_s0 = inlined_call_operand.hbm [shape: f32[16,32], index: 0, kind: input, shape index: {}]   ;;  %s268_s1 = inlined_call_operand.hbm [shape: f32[32,32], index: 1, kind: input, shape index: {}]   ;;  %s269_s2 = inlined_call_operand.vmem [shape: f32[1,32], index: 2, kind: input, shape index: {}]   ;;  %s270_s3 = inlined_call_operand.vmem [shape: f32[1,32], index: 3, kind: input, shape index: {}]   ;;  %s271_s4 = inlined_call_operand.<no memory space> [shape: f32[1,1], index: 4, kind: input, shape index: {}]   ;;  %s272_s5 = inlined_call_operand.vmem [shape: f32[16,1], index: 5, kind: output, shape index: {}]  }
   0x1   :  { %v10_v0 = vstv %s271_s4 }
   0x2   :  { %11 = vst [vmem:[#allocation2] sm:$0x1] %v10_v0 }
   0x3   :  { %12 = vsyncpa [#allocation4], 0  ;;  %s18_s22 = sshll.u32 %s267_s0, 4  ;;  %s19_s22 = int_to_ptr.hbm [resolvable:$true] %s18_s22 }
   0x4   :  { %13 = vsyncpa [#allocation6], 0  ;;  %s208_s23 = smov [#allocation3]   ;;  %s31_s27 = sshll.u32 %s268_s1, 4  ;;  %s32_s27 = int_to_ptr.hbm [resolvable:$true] %s31_s27 }
   0x5   :  { %s20_s24 = sshll.u32 %s208_s23, 4  ;;  %s209_s28 = smov 128   ;;  %s21_s24 = int_to_ptr.vmem [resolvable:$true] %s20_s24 }
   0x6   :  { %s210_s29 = smov 8   ;;  %s211_s4 = smov [#allocation5]  }
   0x7   :  { %26 = dma.hbm_to_vmem [thread:$0]  %s19_s22, 256, %s21_s24, [#allocation4], %s209_s28, %s209_s28, %s210_s29  }
   0x8   :  { %s33_s30 = sshll.u32 %s211_s4, 4  ;;  %s34_s30 = int_to_ptr.vmem [resolvable:$true] %s33_s30 }
   0x9   :  { %39 = dma.hbm_to_vmem [thread:$0]  %s32_s27, 512, %s34_s30, [#allocation6], %s209_s28, %s209_s28, %s210_s29  }
   0xa   :  { %204 = dma.done.wait [#allocation4], 256  }
   0xb   :  { %205 = vsyncadd [#allocation4], 4294967040 }
   0xc   :  { %206 = dma.done.wait [#allocation6], 512  }
   0xd   :  { %207 = vsyncadd [#allocation6], 4294966784  ;;  %v59_v1 = vld [vmem:[#allocation5 + $0x18] sm:$0xff]  ;;  %v58_v2 = vld [vmem:[#allocation5 + $0x10] sm:$0xff]  ;;  %vm64_vm0 = vcmask 261120   ;;  %vm130_vm1 = vcmask 7168  }
   0xe   :  { %83 = vmatpush.msra.mxu0 %v59_v1  ;;  %141 = vmatpush.msra.mxu1 %v59_v1  ;;  %v57_v3 = vld [vmem:[#allocation5 + $0x8] sm:$0xff]  ;;  %v56_v4 = vld [vmem:[#allocation5] sm:$0xff]  ;;  %v54_v5 = vld [vmem:[#allocation3] sm:$0xff] }
   0xf   :  { %v55_v6 = vld [vmem:[#allocation3 + $0x8] sm:$0xff]  ;;  %v149_v7 = vld [vmem:[%s269_s2] ss:$0 sm:$0xff] }
  0x10   :  { %84 = vmatpush.msra.mxu0 %v58_v2  ;;  %142 = vmatpush.msra.mxu1 %v58_v2  ;;  %v150_v26 = vld [vmem:[%s270_s3] ss:$0 sm:$0xff] }
  0x11   :  { %v151_v35 = vld [vmem:[#allocation2] ss:$0 sm:$0xff] }
  0x12   :  { %85 = vmatpush.msra.mxu0 %v57_v3  ;;  %143 = vmatpush.msra.mxu1 %v57_v3 }
  0x14   :  { %86 = vmatpush.msra.mxu0 %v56_v4  ;;  %144 = vmatpush.msra.mxu1 %v56_v4 }
  0x15   :  { %139 = vmatmul.msk.f32.vlgmr.msra.gmra.mxu0 %vm64_vm0, %v54_v5  ;;  %140 = vmatmul.msk.f32.vlgmr.msra.gmra.mxu1 %vm64_vm0, %v55_v6 }
  0x92   :  { %v88_v8 = vpop.f32.mrf.mxu0  ;;  %v91_v9 = vpop.f32.mrf.mxu1 }
  0x93   :  { %v89_v10 = vadd.f32 %v149_v7, %v88_v8  ;;  %v92_v11 = vadd.f32 %v149_v7, %v91_v9 }
  0x95   :  { %v96_v12 = vmul.f32 0.044715, %v89_v10  ;;  %v97_v13 = vmul.f32 0.044715, %v92_v11  ;;  %v94_v24 = vmul.f32 0.5, %v89_v10  ;;  %v95_v30 = vmul.f32 0.5, %v92_v11 }
  0x97   :  { %v99_v14 = vmul.f32 %v97_v13, %v92_v11  ;;  %v98_v15 = vmul.f32 %v96_v12, %v89_v10 }
  0x99   :  { %v100_v16 = vmul.f32 %v98_v15, %v89_v10  ;;  %v101_v17 = vmul.f32 %v99_v14, %v92_v11 }
  0x9b   :  { %v102_v18 = vadd.f32 %v100_v16, %v89_v10  ;;  %v103_v19 = vadd.f32 %v101_v17, %v92_v11 }
  0x9d   :  { %v104_v20 = vmul.f32 0.7978846, %v102_v18  ;;  %v105_v21 = vmul.f32 0.7978846, %v103_v19 }
  0x9f   :  { %152 = vtanh.f32 %v104_v20 }
  0xa0   :  { %154 = vtanh.f32 %v105_v21 }
  0xa5   :  { %v153_v22 = vpop.eup %152 }
  0xa6   :  { %v155_v23 = vpop.eup %154  ;;  %v108_v25 = vadd.f32 1.0, %v153_v22 }
  0xa7   :  { %v109_v28 = vadd.f32 1.0, %v155_v23 }
  0xa8   :  { %v110_v27 = vmul.f32 %v108_v25, %v94_v24 }
  0xa9   :  { %v111_v32 = vmul.f32 %v109_v28, %v95_v30 }
  0xaa   :  { %v116_v29 = vmul.f32 %v150_v26, %v110_v27 }
  0xab   :  { %v117_v33 = vmul.f32 %v150_v26, %v111_v32 }
  0xac   :  { %v118_v31 = vsel %vm64_vm0, %v116_v29, 0.0 }
  0xad   :  { %119 = vadd.xlane.f32.xlu0 %v118_v31  ;;  %v121_v34 = vsel %vm64_vm0, %v117_v33, 0.0 }
  0xb5   :  { %122 = vadd.xlane.f32.xlu0 %v121_v34 }
 0x120   :  { %v120_v36 = vpop.xlane.xlu0 %119 }
 0x121   :  { %v128_v37 = vadd.f32 %v151_v35, %v120_v36 }
 0x123   :  { %131 = vst.msk [vmem:[%s272_s5] sm:$0xff] %vm130_vm1, %v128_v37 }
 0x128   :  { %v123_v38 = vpop.xlane.xlu0 %122 }
 0x129   :  { %v129_v39 = vadd.f32 %v151_v35, %v123_v38 }
 0x12b   :  { %132 = vst.msk [vmem:[%s272_s5 + $0x8] sm:$0xff] %vm130_vm1, %v129_v39 }
 0x12c   :  { %137 = vsyncpa [#allocation4], 1 }
 0x12d   :  { %138 = vsyncpa [#allocation6], 1 }

</bundles_post_ra>
